<compile_context>
chip_gen: v7x
topology: tpu7x:2x2x1
jax: 0.10.0
libtpu: 0.0.40
codegen_flags: <defaults>
</compile_context>

<pallas_src>
import functools
import math

import jax
import jax.numpy as jnp
from jax import lax
from jax.experimental import pallas as pl
from jax.experimental.pallas import tpu as pltpu


def _sinusoidal_kernel(x_ref, out_ref, *, dim, num_steps, rescale_steps):
    # x_ref:   (tb, 1)   f32 timesteps (batch along sublanes)
    # out_ref: (tb, dim) f32 output: [sin(emb) | cos(emb)]
    half = dim // 2

    x = x_ref[...]
    x = x / num_steps * rescale_steps          # same op order as the reference

    # Frequency table recomputed in-kernel: `half` exps per grid step on the
    # EUP slot, which is otherwise idle here -> effectively free, and it saves
    # an input DMA + HBM buffer.
    scale = math.log(10000.0) / (half - 1)
    k = lax.broadcasted_iota(jnp.int32, (1, half), 1).astype(jnp.float32)
    freqs = jnp.exp(k * (-scale))              # (1, half)

    emb = x * freqs                            # (tb, 1) * (1, half) -> (tb, half)

    # Build the full-width row in registers and emit ONE lane-dense store
    # instead of two half-width masked stores.
    out_ref[...] = jnp.concatenate([jnp.sin(emb), jnp.cos(emb)], axis=-1)


def _choose_block_b(B, dim, max_block_b=None):
    """Pick the batch tile size.

    VMEM per grid step (double buffered):
      out: 2 * tb * dim * 4 B
      x  : 2 * tb * 512  B   ((tb, 1) blocks are lane-padded to (8,128) tiles)
    Budget ~12 MiB so the pipeline fits the scoped-VMEM default on every
    generation (v5e 16 MiB, v6e/v7x 32 MiB) with headroom for compiler scratch.
    """
    budget = 12 * 1024 * 1024
    bytes_per_row = 8 * dim + 1024
    cap = max(8, (budget // bytes_per_row) // 8 * 8)
    cap = min(cap, 4096)              # diminishing returns past a few thousand rows
    if max_block_b is not None:
        cap = max(8, min(cap, (max_block_b // 8) * 8))

    if B <= cap:
        if B >= 1024:
            # v7x megacore: give each of the 2 TensorCores one block.
            return ((-(-B // 2)) + 7) // 8 * 8
        return B                      # single block; block dim == full array dim
    return cap                        # multiple of 8; ragged last block is masked


def sinusoidal_pos_emb(x, dim, num_steps, rescale_steps=4000.0, max_block_b=None):
    """Pallas TPU implementation of SinusoidalPosEmb.forward.

    x: (B,) array of timesteps.
    Returns: (B, dim) float32 embedding  [sin | cos], matching torch.cat order.
    """
    assert dim % 2 == 0 and dim >= 4, "dim must be even and >= 4"
    B = x.shape[0]
    half_dim = dim // 2

    tb = _choose_block_b(B, dim, max_block_b)
    num_blocks = pl.cdiv(B, tb)       # ragged last block handled by Pallas

    x2d = x.astype(jnp.float32).reshape(B, 1)

    kernel = functools.partial(
        _sinusoidal_kernel,
        dim=dim,
        num_steps=float(num_steps),
        rescale_steps=float(rescale_steps),
    )

    cost = pl.CostEstimate(
        flops=3 * B * half_dim,              # rescale + outer-product multiply
        transcendentals=B * dim,             # sin + cos (plus negligible exp)
        bytes_accessed=B * 4 + B * dim * 4,  # x read + out write
    )

    return pl.pallas_call(
        kernel,
        out_shape=jax.ShapeDtypeStruct((B, dim), jnp.float32),
        grid=(num_blocks,),
        in_specs=[pl.BlockSpec((tb, 1), lambda i: (i, 0))],
        out_specs=pl.BlockSpec((tb, dim), lambda i: (i, 0)),
        compiler_params=pltpu.CompilerParams(
            dimension_semantics=("parallel",),        # megacore on v7x
            vmem_limit_bytes=32 * 1024 * 1024,
        ),
        cost_estimate=cost,
    )(x2d)


def _reference(x, dim, num_steps, rescale_steps=4000.0):
    x = x.astype(jnp.float32) / num_steps * rescale_steps
    half_dim = dim // 2
    emb = math.log(10000.0) / (half_dim - 1)
    emb = jnp.exp(jnp.arange(half_dim, dtype=jnp.float32) * -emb)
    emb = x[:, None] * emb[None, :]
    return jnp.concatenate([jnp.sin(emb), jnp.cos(emb)], axis=-1)


def _check(B, dim, num_steps, rescale_steps, key, max_block_b=None):
    x = jax.random.randint(key, (B,), 0, num_steps).astype(jnp.float32)
    out = jax.block_until_ready(
        sinusoidal_pos_emb(x, dim, num_steps, rescale_steps, max_block_b=max_block_b))
    ref = _reference(x, dim, num_steps, rescale_steps)
    assert out.shape == (B, dim), out.shape
    # Arguments reach ~rescale_steps (4e3); f32 sin/cos there is sensitive to
    # ~ulp(4e3)=2.4e-4 in the argument, so allow conditioning-level tolerance.
    assert jnp.allclose(out, ref, atol=2e-3, rtol=0.0), (
        f"mismatch vs reference (B={B}, dim={dim}), max abs diff = "
        f"{float(jnp.max(jnp.abs(out - ref)))}")


if __name__ == "__main__":
    key = jax.random.PRNGKey(0)
    num_steps = 1000
    rescale_steps = 4000.0

    # Main small-shape check (single lane-dense block, dim multiple of 128).
    _check(B=8, dim=128, num_steps=num_steps, rescale_steps=rescale_steps, key=key)

    # Multi-block grid with a ragged (masked) last block and sub-128 dim,
    # exercising the no-pad / no-slice boundary handling.
    _check(B=20, dim=32, num_steps=num_steps, rescale_steps=rescale_steps,
           key=jax.random.PRNGKey(1), max_block_b=8)

    print("KERNEL_OK")
</pallas_src>

<mosaic_0001>
module attributes {stable_mosaic.version = 11 : i64} {
  func.func @_sinusoidal_kernel(%arg0: i32, %arg1: memref<8x1xf32, #tpu.memory_space<vmem>>, %arg2: memref<8x128xf32, #tpu.memory_space<vmem>>) attributes {dimension_semantics = [#tpu.dimension_semantics<parallel>], iteration_bounds = array<i64: 1>, scalar_prefetch = 0 : i64, scratch_operands = 0 : i64, tpu.core_type = #tpu.core_type<tc>, window_params = [{transform_indices = @transform_0, window_bounds = array<i64: 8, 1>}, {transform_indices = @transform_1, window_bounds = array<i64: 8, 128>}]} {
    %c0 = arith.constant 0 : index
    %c0_0 = arith.constant 0 : index
    %0 = vector.load %arg1[%c0, %c0_0] : memref<8x1xf32, #tpu.memory_space<vmem>>, vector<8x1xf32>
    %cst = arith.constant 1.000000e+03 : f32
    %1 = vector.broadcast %cst : f32 to vector<8x1xf32>
    %2 = arith.divf %0, %1 : vector<8x1xf32>
    %cst_1 = arith.constant 4.000000e+03 : f32
    %3 = vector.broadcast %cst_1 : f32 to vector<8x1xf32>
    %4 = arith.mulf %2, %3 : vector<8x1xf32>
    %5 = tpu.iota {dimensions = array<i32: 1>} : vector<1x64xi32>
    %6 = arith.sitofp %5 : vector<1x64xi32> to vector<1x64xf32>
    %cst_2 = arith.constant -0.146195874 : f32
    %7 = vector.broadcast %cst_2 : f32 to vector<1x64xf32>
    %8 = arith.mulf %6, %7 : vector<1x64xf32>
    %9 = math.exp %8 : vector<1x64xf32>
    %10 = vector.broadcast %4 : vector<8x1xf32> to vector<8x64xf32>
    %11 = vector.broadcast %9 : vector<1x64xf32> to vector<8x64xf32>
    %12 = arith.mulf %10, %11 : vector<8x64xf32>
    %13 = math.sin %12 : vector<8x64xf32>
    %14 = math.cos %12 : vector<8x64xf32>
    %15 = tpu.concatenate %13, %14 in 1 : vector<8x64xf32>, vector<8x64xf32> -> vector<8x128xf32>
    %c0_3 = arith.constant 0 : index
    %c0_4 = arith.constant 0 : index
    %16 = vector.load %arg2[%c0_3, %c0_4] : memref<8x128xf32, #tpu.memory_space<vmem>>, vector<8x128xf32>
    tpu.vector_store %arg2[%c0_3, %c0_4], %15 {strides = array<i32>} : memref<8x128xf32, #tpu.memory_space<vmem>>, vector<8x128xf32>,
    return
  }
  func.func @transform_0(%arg0: i32) -> (i32, i32) {
    %c0_i32 = arith.constant 0 : i32
    %c0_i32_0 = arith.constant 0 : i32
    return %arg0, %c0_i32 : i32, i32
  }
  func.func @transform_1(%arg0: i32) -> (i32, i32) {
    %c0_i32 = arith.constant 0 : i32
    %c0_i32_0 = arith.constant 0 : i32
    return %arg0, %c0_i32 : i32, i32
  }
}

</mosaic_0001>

<bundles_post_ra>
// kernel: tpu_custom_call.1
= control target key start
LH: loop header
LB: loop body
LE: loop exit
PB: predicated region body
PF: predicated region fallthrough
CT: control target
= control target key end

     0   :  { %v305_v1 = vmov 0   ;;  %s360_s0 = inlined_call_operand.vmem [shape: f32[8,1], index: 0, kind: input, shape index: {}]   ;;  %s361_s1 = inlined_call_operand.hbm [shape: f32[8,128], index: 1, kind: output, shape index: {}]  }
   0x1   :  { %v9_v0 = vld [vmem:[%s360_s0] sm:$0xff]  ;;  %274 = vset.pattern.permute.xlu0 %v305_v1 }
   0x2   :  { %v11_v2 = vmul.f32 0.001, %v9_v0 }
   0x4   :  { %v12_v3 = vmul.f32 4000.0, %v11_v2 }
   0x5   :  { %6 = vsyncpa [#allocation3], 0  ;;  %v13_v4 = vlaneseq  ;;  %v306_v22 = vmov 683565275   ;;  %v307_v24 = vmov 2475754826  }
   0x6   :  { %21 = vperm.xlu0 %274, %v12_v3   ;;  %v308_v27 = vmov 2131351028   ;;  %v309_v30 = vmov 2102212464   ;;  %v310_v33 = vmov 920167782  }
   0x7   :  { %v14_v5 = vand.u32 127, %v13_v4  ;;  %v311_v36 = vmov 1326507024   ;;  %s312_s0 = smov 64   ;;  %s313_s8 = smov [#allocation2]  }
   0x8   :  { %s245_s9 = sshll.u32 %s313_s8, 4  ;;  %s246_s9 = int_to_ptr.vmem [resolvable:$true] %s245_s9 }
   0x9   :  { %v15_v6 = vcvt.s32.f32 %v14_v5  ;;  %s281_s10 = scalar_lea.vmem %s246_s9, 128  ;;  %p286_p1 = scmp.lt.s32.totalorder %s246_s9, %s246_s9 }
   0xa   :  { %p282_p0 = scmp.ne.s32.totalorder %s246_s9, %s281_s10  ;;  %p287_p2 = scmp.lt.s32.totalorder %s281_s10, %s281_s10 }
   0xb   :  { %v16_v7 = vmul.f32 -0.14619587, %v15_v6 }
   0xc   :  { %p288_p3 = por %p287_p2, %p286_p1 }
   0xd   :  { %v17_v8 = vmul.f32 1.442695, %v16_v7 }
   0xe   :  { %p289_p4 = pnand %p288_p3, %p282_p0 }
   0xf   :  { %275 = vpow2.f32 %v17_v8 }
  0x19   :  { %v276_v9 = vpop.eup %275 }
  0x85   :  { %v22_v10 = vpop.permute.xlu0 %21 }
  0x86   :  { %v327_v11 = vmul.f32 %v276_v9, %v22_v10 }
  0x88   :  { %v28_v12 = vand.u32 2139095040, %v327_v11  ;;  %v25_v16 = vand.u32 2147483647, %v327_v11  ;;  %vm27_vm7 = vcmp.lt.s32.totalorder %v327_v11, 0  ;;  %vm117_vm15 = vweird.f32 %v327_v11 }
  0x8a   :  { %v29_v13 = vshrl.u32 %v28_v12, 23  ;;  %v32_v19 = vand.u32 8388607, %v25_v16  ;;  %vm26_vm8 = vcmp.le.f32.partialorder %v25_v16, 0.7853982 }
  0x8c   :  { %v253_v14 = vadd.s32 4294967169, %v29_v13  ;;  %v33_v38 = vor.u32 8388608, %v32_v19 }
  0x8e   :  { %v35_v15 = vadd.s32 1, %v253_v14  ;;  %v73_v52 = vshll.u32 %v33_v38, 8 }
  0x90   :  { %vm36_vm0 = vcmp.gt.s32.totalorder %v35_v15, 0 }
  0x91   :  { %v37_v17 = vsel %vm36_vm0, %v35_v15, 0  ;;  %vm236_vm0 = vcmask 523264  }
  0x92   :  { %v39_v18 = vand.u32 31, %v37_v17  ;;  %v38_v21 = vshrl.u32 %v37_v17, 5 }
  0x94   :  { %v40_v20 = vsub.s32 32, %v39_v18  ;;  %v42_v23 = vshll.u32 %v306_v22, %v39_v18  ;;  %v45_v25 = vshll.u32 %v307_v24, %v39_v18  ;;  %v48_v29 = vshll.u32 %v308_v27, %v39_v18 }
  0x95   :  { %v51_v32 = vshll.u32 %v309_v30, %v39_v18  ;;  %v54_v35 = vshll.u32 %v310_v33, %v39_v18  ;;  %vm57_vm1 = vcmp.lt.s32.totalorder %v38_v21, 1  ;;  %vm60_vm2 = vcmp.lt.s32.totalorder %v38_v21, 4 }
  0x96   :  { %v43_v26 = vshrl.u32 %v307_v24, %v40_v20  ;;  %v46_v28 = vshrl.u32 %v308_v27, %v40_v20  ;;  %v49_v31 = vshrl.u32 %v309_v30, %v40_v20  ;;  %v52_v34 = vshrl.u32 %v310_v33, %v40_v20 }
  0x97   :  { %v55_v37 = vshrl.u32 %v311_v36, %v40_v20  ;;  %v41_v47 = vshrl.u32 %v306_v22, %v40_v20  ;;  %vm59_vm3 = vcmp.lt.s32.totalorder %v38_v21, 3  ;;  %vm58_vm4 = vcmp.lt.s32.totalorder %v38_v21, 2 }
  0x98   :  { %v44_v39 = vor.u32 %v43_v26, %v42_v23  ;;  %v47_v40 = vor.u32 %v46_v28, %v45_v25  ;;  %v50_v41 = vor.u32 %v49_v31, %v48_v29  ;;  %v53_v42 = vor.u32 %v52_v34, %v51_v32 }
  0x99   :  { %v56_v43 = vor.u32 %v55_v37, %v54_v35 }
  0x9a   :  { %v62_v44 = vsel %vm60_vm2, %v50_v41, 2102212464  ;;  %v65_v45 = vsel %vm57_vm1, %v44_v39, %v47_v40  ;;  %v69_v46 = vsel %vm57_vm1, %v47_v40, %v50_v41  ;;  %v66_v48 = vsel %vm60_vm2, %v53_v42, 920167782 }
  0x9b   :  { %v70_v49 = vsel %vm60_vm2, %v56_v43, 1326507024  ;;  %v67_v50 = vsel %vm59_vm3, %v50_v41, %v66_v48  ;;  %v61_v53 = vsel %vm57_vm1, %v41_v47, %v44_v39  ;;  %v63_v54 = vsel %vm59_vm3, %v47_v40, %v62_v44 }
  0x9c   :  { %v71_v51 = vsel %vm59_vm3, %v53_v42, %v70_v49  ;;  %v68_v55 = vsel %vm58_vm4, %v65_v45, %v67_v50  ;;  %v64_v61 = vsel %vm58_vm4, %v61_v53, %v63_v54 }
  0x9d   :  { %v72_v56 = vsel %vm58_vm4, %v69_v46, %v71_v51  ;;  %v336_v59 = vmul.u32.u64.low %v73_v52, %v68_v55  ;;  %v337_v60 = vmul.u32.u64.high %v73_v52, %v68_v55, %v336_v59  ;;  %v80_v63 = vmul.u32 %v73_v52, %v64_v61 }
  0x9e   :  { %v333_v57 = vmul.u32.u64.low %v73_v52, %v72_v56  ;;  %v334_v58 = vmul.u32.u64.high %v73_v52, %v72_v56, %v333_v57 }
  0x9f   :  { %v83_v62 = vadd.s32 1, %v337_v60 }
  0xa0   :  { %vm82_vm5 = vc.u32 %v334_v58, %v336_v59  ;;  %v81_v12 = vadd.s32 %v336_v59, %v334_v58 }
  0xa1   :  { %v84_v0 = vsel %vm82_vm5, %v83_v62, %v337_v60 }
  0xa2   :  { %v85_v1 = vadd.s32 %v84_v0, %v80_v63 }
  0xa4   :  { %v86_v2 = vadd.s32 536870912, %v85_v1 }
  0xa6   :  { %v87_v3 = vshrl.u32 %v86_v2, 30 }
  0xa8   :  { %v88_v4 = vshll.u32 %v87_v3, 30  ;;  %v111_v25 = vsub.s32 4, %v87_v3 }
  0xaa   :  { %v89_v5 = vsub.s32 %v85_v1, %v88_v4  ;;  %v112_v28 = vsel %vm27_vm7, %v111_v25, %v87_v3 }
  0xab   :  { %v114_v30 = vsel %vm26_vm8, 0, %v112_v28 }
  0xac   :  { %v91_v6 = vsub.s32 0, %v89_v5  ;;  %v118_v31 = vadd.s32 3, %v114_v30  ;;  %v222_v33 = vand.u32 3, %v114_v30 }
  0xae   :  { %v254_v7 = vmin.u32 %v91_v6, %v89_v5  ;;  %v119_v32 = vand.u32 3, %v118_v31  ;;  %vm227_vm10 = vcmp.eq.s32.totalorder %v222_v33, 2  ;;  %vm224_vm12 = vcmp.eq.s32.totalorder %v222_v33, 0 }
  0xaf   :  { %vm223_vm14 = vcmp.lt.s32.totalorder %v222_v33, 2 }
  0xb0   :  { %v93_v8 = vclz %v254_v7  ;;  %vm124_vm9 = vcmp.eq.s32.totalorder %v119_v32, 2  ;;  %vm121_vm11 = vcmp.eq.s32.totalorder %v119_v32, 0  ;;  %vm120_vm13 = vcmp.lt.s32.totalorder %v119_v32, 2 }
  0xb2   :  { %v255_v9 = vadd.s32 4294967294, %v93_v8 }
  0xb4   :  { %vm256_vm6 = vcmp.lt.s32.totalorder %v255_v9, 0 }
  0xb5   :  { %v96_v10 = vsel %vm256_vm6, 0, %v255_v9 }
  0xb6   :  { %v97_v13 = vsub.s32 32, %v96_v10  ;;  %v101_v14 = vsub.s32 4294967266, %v96_v10  ;;  %v98_v15 = vshll.u32 %v89_v5, %v96_v10 }
  0xb8   :  { %v99_v17 = vshrl.u32 %v81_v12, %v97_v13  ;;  %v102_v18 = vadd.s32 127, %v101_v14 }
  0xba   :  { %v100_v19 = vor.u32 %v99_v17, %v98_v15  ;;  %v103_v20 = vshll.u32 %v102_v18, 23 }
  0xbc   :  { %v104_v21 = vor.u32 4788187, %v103_v20  ;;  %v107_v23 = vcvt.s32.f32 %v100_v19 }
  0xbe   :  { %v105_v22 = vand.u32 2147483647, %v104_v21 }
  0xc0   :  { %v108_v24 = vmul.f32 %v107_v23, %v105_v22 }
  0xc2   :  { %v109_v26 = vxor.u32 2147483648, %v108_v24 }
  0xc4   :  { %v110_v27 = vsel %vm27_vm7, %v109_v26, %v108_v24 }
  0xc5   :  { %v113_v29 = vsel %vm26_vm8, %v327_v11, %v110_v27 }
  0xc6   :  { %277 = vcosq.f32 %v113_v29 }
  0xc7   :  { %279 = vsinq.f32 %v113_v29 }
  0xd0   :  { %v278_v34 = vpop.eup %277 }
  0xd1   :  { %v280_v35 = vpop.eup %279  ;;  %v125_v36 = vxor.u32 2147483648, %v278_v34 }
  0xd2   :  { %v122_v37 = vxor.u32 2147483648, %v280_v35 }
  0xd3   :  { %v229_v38 = vsel %vm227_vm10, %v125_v36, %v280_v35  ;;  %v126_v39 = vsel %vm124_vm9, %v125_v36, %v280_v35 }
  0xd4   :  { %v226_v16 = vsel %vm224_vm12, %v278_v34, %v122_v37  ;;  %v123_v40 = vsel %vm121_vm11, %v278_v34, %v122_v37 }
  0xd5   :  { %v230_v41 = vsel %vm223_vm14, %v226_v16, %v229_v38  ;;  %v127_v42 = vsel %vm120_vm13, %v123_v40, %v126_v39 }
  0xd6   :  { %v231_v43 = vsel %vm117_vm15, nan, %v230_v41  ;;  %v128_v44 = vsel %vm117_vm15, nan, %v127_v42 }
  0xd7   :  { %233 = vrot.lane.b32.xlu0 %v231_v43, %s312_s0 }
 0x149   :  { %v234_v45 = vpop.permute.xlu0 %233 }
 0x14a   :  { %v237_v46 = vsel %vm236_vm0, %v128_v44, %v234_v45 }
 0x14b   :  { %238 = vst [vmem:[#allocation2] sm:$0xff] %v237_v46 }
 0x14c   :  { %292 = shalt.err (!%p289_p4)
}
 0x14d   :  { %s293_s13 = scalar_lea.hbm %s361_s1, 128 }
 0x14e   :  { %p294_p5 = scmp.ne.s32.totalorder %s361_s1, %s293_s13  ;;  %p297_p6 = scmp.lt.u32.totalorder %s293_s13, %s361_s1 }
 0x150   :  { %p299_p7 = pnand %p297_p6, %p294_p5 }
 0x152   :  { %302 = shalt.err (!%p299_p7)
}
 0x153   :  { %248 = dma.vmem_to_hbm [thread:$0]  %s246_s9, 128, %s361_s1, [#allocation3]  }
 0x154   :  { %303 = dma.done.wait [#allocation3], 128  }
 0x155   :  { %304 = vsyncadd [#allocation3], 4294967168 }
 0x156   :  { %252 = vsyncpa [#allocation3], 1 }

</bundles_post_ra>
